<compile_context>
chip_gen: v5e
topology: v5e:2x2
jax: 0.10.0
libtpu: 0.0.40
codegen_flags: <defaults>
</compile_context>

<pallas_src>
import jax
import jax.numpy as jnp
from jax.experimental import pallas as pl
from jax.experimental.pallas import tpu as pltpu


def _round_up(x, m):
    return ((x + m - 1) // m) * m


def _cdiv(a, b):
    return (a + b - 1) // b


def _linear_kernel(x_ref, w_ref, b_ref, o_ref):
    # x_ref: (tm, K) bf16 ; w_ref: (K, tn) bf16 (MXU-native RHS, lane-dense along N)
    # b_ref: (1, tn) f32  ; o_ref: (tm, tn) f32
    acc = jnp.dot(x_ref[...], w_ref[...], preferred_element_type=jnp.float32)
    o_ref[...] = (acc + b_ref[...]).astype(o_ref.dtype)


def _choose_tiles(M, N, K, out_itemsize=4, budget_bytes=24 * 1024 * 1024):
    # tm: multiple of 16 (bf16 packs 16 sublanes per vreg), capped at 512.
    if M >= 512:
        tm = 512
    elif M >= 256:
        tm = 256
    elif M >= 128:
        tm = 128
    else:
        tm = _round_up(M, 16)
    m_blocks = _cdiv(M, tm)

    n_ceil = _round_up(N, 128)
    cands = [t for t in (2048, 1024, 512, 256, 128) if t <= n_ceil] or [128]
    # v7x: keep >=2 blocks along at least one "parallel" axis so both TCs get work.
    if m_blocks == 1 and n_ceil >= 256:
        two = [t for t in cands if _cdiv(n_ceil, t) >= 2]
        if two:
            cands = two

    def fits(tm_, tn_):
        # BlockSpec double-buffers each operand and the output tile.
        per_step = tm_ * K * 2 + K * tn_ * 2 + tn_ * 4 + tm_ * tn_ * out_itemsize
        return 2 * per_step <= budget_bytes

    for tn in cands:
        if fits(tm, tn):
            return tm, tn
    tn = cands[-1]
    while tm > 16 and not fits(tm, tn):  # only reachable for very large K
        tm = max(16, _round_up(tm // 2, 16))
    return tm, tn


def prior_model_forward(backbone_output, weight, bias, *,
                        compute_dtype=jnp.bfloat16, force_pallas=False):
    """PriorModel('kw').forward: backbone_output @ weight.T + bias on the last dim.

    backbone_output: (..., ninp); weight: (ntoken, ninp); bias: (ntoken,).
    Returns (..., ntoken) in float32 (PyTorch nn.Linear semantics).
    """
    orig_shape = backbone_output.shape
    ninp = orig_shape[-1]
    ntoken = weight.shape[0]

    x2d = backbone_output.reshape(-1, ninp)
    M, K = x2d.shape
    N = ntoken

    # Small-shape fast path: below ~one tile the pad/cast/launch overhead exceeds the
    # matmul itself; a plain f32 XLA matmul is faster and bit-exact vs PyTorch.
    if not force_pallas and (M <= 128 and N <= 512):
        out = (x2d.astype(jnp.float32) @ weight.astype(jnp.float32).T
               + bias.astype(jnp.float32))
        return out.reshape(*orig_shape[:-1], ntoken)

    tm, tn = _choose_tiles(M, N, K)
    M_pad = _round_up(M, tm)
    N_pad = _round_up(N, tn)

    # bf16 operand streaming (f32 accumulate in the MXU). Weight pre-transposed once to
    # the MXU-native (K, N_pad) layout -> contiguous lane-dense rows for the weight DMA.
    x_p = jnp.pad(x2d, ((0, M_pad - M), (0, 0))).astype(compute_dtype)
    w_kn = jnp.pad(weight.astype(compute_dtype).T, ((0, 0), (0, N_pad - N)))
    b_p = jnp.pad(bias.astype(jnp.float32), (0, N_pad - N)).reshape(1, N_pad)

    m_blocks = M_pad // tm
    n_blocks = N_pad // tn

    # Adaptive grid ordering: make the smaller operand's axis the inner (fastest) one so
    # the larger operand's block index is invariant over the inner loop and is DMA'd from
    # HBM exactly once. LM-head shapes (N >> M): M inner, weight resident.
    m_inner = N_pad >= M_pad
    if m_inner:
        grid = (n_blocks, m_blocks)
        x_map = lambda j, i: (i, 0)
        w_map = lambda j, i: (0, j)
        b_map = lambda j, i: (0, j)
        o_map = lambda j, i: (i, j)
    else:
        grid = (m_blocks, n_blocks)
        x_map = lambda i, j: (i, 0)
        w_map = lambda i, j: (0, j)
        b_map = lambda i, j: (0, j)
        o_map = lambda i, j: (i, j)

    w_reads = 1 if m_inner else m_blocks
    x_reads = n_blocks if m_inner else 1
    cost = pl.CostEstimate(
        flops=2 * M_pad * K * N_pad,
        transcendentals=0,
        bytes_accessed=(
            x_reads * M_pad * K * 2      # bf16 activations (re-read per outer block)
            + w_reads * K * N_pad * 2    # bf16 weight
            + N_pad * 4                  # f32 bias
            + M_pad * N_pad * 4          # f32 output store
        ),
    )

    out_p = pl.pallas_call(
        _linear_kernel,
        out_shape=jax.ShapeDtypeStruct((M_pad, N_pad), jnp.float32),
        grid_spec=pltpu.PrefetchScalarGridSpec(
            num_scalar_prefetch=0,
            grid=grid,
            in_specs=[
                pl.BlockSpec((tm, K), x_map),   # activations (tm, K), K un-tiled (small)
                pl.BlockSpec((K, tn), w_map),   # weight, MXU-native (K, tn)
                pl.BlockSpec((1, tn), b_map),   # bias slice
            ],
            out_specs=pl.BlockSpec((tm, tn), o_map),
        ),
        compiler_params=pltpu.CompilerParams(
            dimension_semantics=("parallel", "parallel"),
            vmem_limit_bytes=48 * 1024 * 1024,
        ),
        cost_estimate=cost,
    )(x_p, w_kn, b_p)

    out = out_p[:M, :N]
    return out.reshape(*orig_shape[:-1], ntoken)


if __name__ == "__main__":
    key = jax.random.PRNGKey(0)
    kx1, kw1, kx2, kw2 = jax.random.split(key, 4)
    initrange = 0.1  # init_weights(initrange=0.1): weight ~ U(-0.1, 0.1), bias = 0

    # --- Case 1: module demo size (seq=8, batch=2, ninp=32, ntoken=64). ---
    seq, batch, ninp, ntoken = 8, 2, 32, 64
    x1 = jax.random.normal(kx1, (seq, batch, ninp), dtype=jnp.float32)
    w1 = jax.random.uniform(kw1, (ntoken, ninp), dtype=jnp.float32,
                            minval=-initrange, maxval=initrange)
    b1 = jnp.zeros((ntoken,), dtype=jnp.float32)
    ref1 = x1 @ w1.T + b1

    # Force the Pallas path so the kernel itself is exercised at small shape.
    fwd_pallas = jax.jit(lambda x, w, b: prior_model_forward(x, w, b, force_pallas=True))
    out1 = jax.block_until_ready(fwd_pallas(x1, w1, b1))
    assert out1.shape == (seq, batch, ntoken) and out1.dtype == jnp.float32
    assert jnp.allclose(out1, ref1, atol=3e-2, rtol=3e-2), \
        float(jnp.max(jnp.abs(out1 - ref1)))

    # Default path at this size takes the exact small-shape fast path.
    out1_fast = jax.block_until_ready(jax.jit(prior_model_forward)(x1, w1, b1))
    assert jnp.allclose(out1_fast, ref1, atol=1e-5, rtol=1e-5)

    # --- Case 2: LM-head-like shape (N >> M) exercising the tiled Pallas path. ---
    seq2, batch2, ninp2, ntoken2 = 8, 16, 64, 1024
    x2 = jax.random.normal(kx2, (seq2, batch2, ninp2), dtype=jnp.float32)
    w2 = jax.random.uniform(kw2, (ntoken2, ninp2), dtype=jnp.float32,
                            minval=-initrange, maxval=initrange)
    b2 = 0.01 * jax.random.normal(jax.random.PRNGKey(1), (ntoken2,), dtype=jnp.float32)
    ref2 = x2 @ w2.T + b2

    out2 = jax.block_until_ready(jax.jit(prior_model_forward)(x2, w2, b2))
    assert out2.shape == (seq2, batch2, ntoken2) and out2.dtype == jnp.float32
    assert jnp.allclose(out2, ref2, atol=3e-2, rtol=3e-2), \
        float(jnp.max(jnp.abs(out2 - ref2)))

    print("KERNEL_OK")
</pallas_src>

<mosaic_0001>
module attributes {stable_mosaic.version = 11 : i64} {
  func.func @_linear_kernel(%arg0: i32, %arg1: i32, %arg2: memref<16x32xbf16, #tpu.memory_space<vmem>>, %arg3: memref<32x128xbf16, #tpu.memory_space<vmem>>, %arg4: memref<1x128xf32, #tpu.memory_space<vmem>>, %arg5: memref<16x128xf32, #tpu.memory_space<vmem>>) attributes {dimension_semantics = [#tpu.dimension_semantics<parallel>, #tpu.dimension_semantics<parallel>], iteration_bounds = array<i64: 1, 1>, scalar_prefetch = 0 : i64, scratch_operands = 0 : i64, tpu.core_type = #tpu.core_type<tc>, window_params = [{transform_indices = @transform_0, window_bounds = array<i64: 16, 32>}, {transform_indices = @transform_1, window_bounds = array<i64: 32, 128>}, {transform_indices = @transform_2, window_bounds = array<i64: 1, 128>}, {transform_indices = @transform_3, window_bounds = array<i64: 16, 128>}]} {
    %c0 = arith.constant 0 : index
    %c0_0 = arith.constant 0 : index
    %0 = vector.load %arg2[%c0, %c0_0] : memref<16x32xbf16, #tpu.memory_space<vmem>>, vector<16x32xbf16>
    %c0_1 = arith.constant 0 : index
    %c0_2 = arith.constant 0 : index
    %1 = vector.load %arg3[%c0_1, %c0_2] : memref<32x128xbf16, #tpu.memory_space<vmem>>, vector<32x128xbf16>
    %cst = arith.constant dense<0.000000e+00> : vector<16x128xf32>
    %2 = tpu.matmul %0, %1, %cst {dimension_numbers = #tpu.dot_dimension_numbers<[1], [0], [0], [1], [0, 0, 1, 1], [], []>} : vector<16x32xbf16>, vector<32x128xbf16>, vector<16x128xf32> -> vector<16x128xf32>
    %c0_3 = arith.constant 0 : index
    %c0_4 = arith.constant 0 : index
    %3 = vector.load %arg4[%c0_3, %c0_4] : memref<1x128xf32, #tpu.memory_space<vmem>>, vector<1x128xf32>
    %4 = vector.broadcast %3 : vector<1x128xf32> to vector<16x128xf32>
    %5 = arith.addf %2, %4 : vector<16x128xf32>
    %c0_5 = arith.constant 0 : index
    %c0_6 = arith.constant 0 : index
    %6 = vector.load %arg5[%c0_5, %c0_6] : memref<16x128xf32, #tpu.memory_space<vmem>>, vector<16x128xf32>
    tpu.vector_store %arg5[%c0_5, %c0_6], %5 {strides = array<i32>} : memref<16x128xf32, #tpu.memory_space<vmem>>, vector<16x128xf32>,
    return
  }
  func.func @transform_0(%arg0: i32, %arg1: i32) -> (i32, i32) {
    %c0_i32 = arith.constant 0 : i32
    %c0_i32_0 = arith.constant 0 : i32
    return %arg1, %c0_i32 : i32, i32
  }
  func.func @transform_1(%arg0: i32, %arg1: i32) -> (i32, i32) {
    %c0_i32 = arith.constant 0 : i32
    %c0_i32_0 = arith.constant 0 : i32
    return %c0_i32, %arg0 : i32, i32
  }
  func.func @transform_2(%arg0: i32, %arg1: i32) -> (i32, i32) {
    %c0_i32 = arith.constant 0 : i32
    %c0_i32_0 = arith.constant 0 : i32
    return %c0_i32, %arg0 : i32, i32
  }
  func.func @transform_3(%arg0: i32, %arg1: i32) -> (i32, i32) {
    %c0_i32 = arith.constant 0 : i32
    return %arg1, %arg0 : i32, i32
  }
}

</mosaic_0001>

<bundles_post_ra>
// kernel: _lambda_.1
= control target key start
LH: loop header
LB: loop body
LE: loop exit
PB: predicated region body
PF: predicated region fallthrough
CT: control target
= control target key end

     0   :  { %s165_s0 = inlined_call_operand.vmem [shape: bf16[16,32], index: 0, kind: input, shape index: {}]   ;;  %s166_s1 = inlined_call_operand.vmem [shape: bf16[32,128], index: 1, kind: input, shape index: {}]   ;;  %s167_s2 = inlined_call_operand.vmem [shape: f32[1,128], index: 2, kind: input, shape index: {}]   ;;  %s168_s3 = inlined_call_operand.hbm [shape: f32[16,128], index: 3, kind: output, shape index: {}]  }
   0x1   :  { %v96_v0 = vld [vmem:[%s166_s1 + $0x8] sm:$0xff] }
   0x2   :  { %8 = vsyncpa [#allocation3], 0  ;;  %53 = vmatpush.bf16.msra.mxu0 %v96_v0  ;;  %v95_v1 = vld [vmem:[%s166_s1] sm:$0xff]  ;;  %vm43_vm0 = vcmask 261120   ;;  %s127_s20 = smov [#allocation2]   ;;  %s69_s1 = sshll.u32 %s168_s3, 4  ;;  %s70_s1 = int_to_ptr.hbm [resolvable:$true] %s69_s1 }
   0x3   :  { %v94_v2 = vld [vmem:[%s165_s0] sm:$0xff]  ;;  %s67_s21 = sshll.u32 %s127_s20, 4  ;;  %s128_s0 = smov 128   ;;  %s68_s21 = int_to_ptr.vmem [resolvable:$true] %s67_s21 }
   0x4   :  { %v100_v3 = vld [vmem:[%s167_s2] ss:$0 sm:$0xff]  ;;  %s129_s24 = smov 8  }
   0x6   :  { %54 = vmatpush.bf16.msra.mxu0 %v95_v1 }
   0x9   :  { %93 = vmatmul.msk.bf16.vlgmr.msra.gmra.mxu0 %vm43_vm0, %v94_v2 }
  0x86   :  { %v56_v4 = vpop.f32.mrf.mxu0 }
  0x87   :  { %v57_v5 = vadd.f32 %v100_v3, %v56_v4 }
  0x89   :  { %61 = vst [vmem:[#allocation2] sm:$0xff] %v57_v5 }
  0x8e   :  { %v58_v6 = vpop.f32.mrf.mxu0 }
  0x8f   :  { %v59_v7 = vadd.f32 %v100_v3, %v58_v6 }
  0x91   :  { %62 = vst [vmem:[#allocation2 + $0x8] sm:$0xff] %v59_v7 }
  0x92   :  { %75 = dma.vmem_to_hbm [thread:$0]  %s68_s21, 256, %s70_s1, [#allocation3], %s128_s0, %s128_s0, %s129_s24  }
  0x93   :  { %125 = dma.done.wait [#allocation3], 256  }
  0x94   :  { %126 = vsyncadd [#allocation3], 4294967040 }
  0x95   :  { %80 = vsyncpa [#allocation3], 1 }

</bundles_post_ra>
